<compile_context>
chip_gen: v6e
topology: v6e:2x2x1
jax: 0.10.0
libtpu: 0.0.40
codegen_flags: <defaults>
</compile_context>

<pallas_src>
import functools

import jax
import jax.numpy as jnp
from jax.experimental import pallas as pl
from jax.experimental.pallas import tpu as pltpu


# Below this many output bytes, skip Pallas and let XLA fuse the broadcast.
_MIN_PALLAS_BYTES = 2 * 1024 * 1024


def _tpu_generation_budgets():
    """Return (per-block output-byte budget, vmem_limit cap) by generation."""
    kind = ""
    try:
        kind = (getattr(jax.devices()[0], "device_kind", "") or "").lower()
    except Exception:
        pass
    if "v7" in kind or "7x" in kind:
        # 3.2 TB/s HBM: large blocks amortize the ~0.35 us per-grid-step
        # overhead.  Physical VMEM is 64 MiB -> cap the scoped request at 48.
        return 12 * 1024 * 1024, 48 * 1024 * 1024
    if "v6" in kind:
        return 8 * 1024 * 1024, 64 * 1024 * 1024
    # v5e (and unknown): 0.82 TB/s -> 4 MiB blocks already hide per-step
    # overhead; physical VMEM is 128 MiB so a 64 MiB scoped cap is safe.
    return 4 * 1024 * 1024, 64 * 1024 * 1024


def _pick_leading_tile(total_rows, bytes_per_row, budget_bytes):
    """Rows per block along the pipelined (second-to-last) output axis.

    Returns either a multiple of 8 (sublane aligned; the pl.cdiv grid masks
    the ragged tail) or the full dim, so the BlockSpec stays layout-legal for
    any shape.  When the row axis is large enough we keep >= 2 grid steps so
    the 'parallel' axis shards across both v7x TensorCores and the writeback
    pipeline has something to overlap.
    """
    t = max(1, int(budget_bytes) // max(1, int(bytes_per_row)))
    if total_rows >= 16:
        t = min(t, total_rows // 2)      # guarantee >= 2 grid steps
    if t >= total_rows:
        return total_rows                # full dim: always layout-legal
    t8 = (t // 8) * 8
    if t8 >= 8:
        return t8
    # Fewer than 8 rows fit the budget (pathologically wide rows): 8 is the
    # smallest aligned partial tile; rely on the raised vmem_limit.
    return min(8, total_rows)


# ----------------------------- Pallas kernels -------------------------------

def _expand_batch_first_kernel(emb_ref, out_ref):
    # emb_ref: (1, L*H) table, resident across the whole grid (constant
    # index_map -> fetched from HBM once).  out_ref: (tb, L*H) lane-dense
    # batch tile; replication is a sublane broadcast, only vst/DMA traffic.
    out_ref[...] = jnp.broadcast_to(emb_ref[...], out_ref.shape)


def _expand_seq_first_kernel(bs, emb_ref, out_ref):
    # emb_ref: (tl, H) row tile (each table row fetched exactly once).
    # out_ref: (tl, bs*H) lane-dense tile: row l holds bs copies of emb[l].
    out_ref[...] = jnp.tile(emb_ref[...], (1, bs))


# ----------------------------- pallas_call wrapper ---------------------------

@functools.partial(
    jax.jit, static_argnames=("bs", "batch_first", "out_block_budget_bytes"))
def _expand_with_pallas(embeddings, *, bs, batch_first,
                        out_block_budget_bytes=None):
    L, H = embeddings.shape
    itemsize = jnp.dtype(embeddings.dtype).itemsize
    gen_budget, vmem_cap = _tpu_generation_budgets()
    budget = int(out_block_budget_bytes) if out_block_budget_bytes else gen_budget

    cost = pl.CostEstimate(
        flops=0, transcendentals=0,
        bytes_accessed=(L * H + bs * L * H) * itemsize)

    if batch_first:
        # Output (bs, L, H) written as a lane-dense (bs, L*H) slab; tile over
        # the batch axis.  The flattened (1, L*H) table has a constant
        # index_map so input HBM traffic stays at L*H bytes total.
        lh = L * H
        table_block_bytes = lh * itemsize          # whole table, double-buffered
        row_bytes = lh * itemsize                  # one output row = one (L,H) plane
        tb = _pick_leading_tile(
            bs, row_bytes, max(256 * 1024, budget - 2 * table_block_bytes))
        grid = (pl.cdiv(bs, tb),)
        needed = 2 * (tb * row_bytes + table_block_bytes)
        vmem_limit = int(min(vmem_cap, max(2 * needed, 32 * 1024 * 1024)))
        out_flat = pl.pallas_call(
            _expand_batch_first_kernel,
            out_shape=jax.ShapeDtypeStruct((bs, lh), embeddings.dtype),
            grid=grid,
            in_specs=[pl.BlockSpec((1, lh), lambda i: (0, 0))],
            out_specs=pl.BlockSpec((tb, lh), lambda i: (i, 0)),
            compiler_params=pltpu.CompilerParams(
                dimension_semantics=("parallel",),
                vmem_limit_bytes=vmem_limit),
            cost_estimate=cost,
        )(embeddings.reshape(1, lh))
        return out_flat.reshape(bs, L, H)
    else:
        # Output (L, bs, H) written as a lane-dense (L, bs*H) slab; tile over
        # the prompt-length axis.  Each table row is read exactly once.
        bh = bs * H
        out_row_bytes = bh * itemsize
        in_row_bytes = H * itemsize
        tl = _pick_leading_tile(L, out_row_bytes + in_row_bytes, budget)
        grid = (pl.cdiv(L, tl),)
        needed = 2 * tl * (out_row_bytes + in_row_bytes)
        vmem_limit = int(min(vmem_cap, max(2 * needed, 32 * 1024 * 1024)))
        out_flat = pl.pallas_call(
            functools.partial(_expand_seq_first_kernel, bs),
            out_shape=jax.ShapeDtypeStruct((L, bh), embeddings.dtype),
            grid=grid,
            in_specs=[pl.BlockSpec((tl, H), lambda i: (i, 0))],
            out_specs=pl.BlockSpec((tl, bh), lambda i: (i, 0)),
            compiler_params=pltpu.CompilerParams(
                dimension_semantics=("parallel",),
                vmem_limit_bytes=vmem_limit),
            cost_estimate=cost,
        )(embeddings)
        return out_flat.reshape(L, bs, H)


def deep_prompt_expand(embeddings, *, bs, batch_first,
                       min_pallas_bytes=_MIN_PALLAS_BYTES):
    """Broadcast the prompt table across the batch, per DeepPrompt.forward."""
    L, H = embeddings.shape
    out_bytes = bs * L * H * jnp.dtype(embeddings.dtype).itemsize
    if out_bytes < min_pallas_bytes:
        # Tiny outputs: Mosaic launch/grid setup dwarfs the copy; XLA can fuse
        # this broadcast into the consumer and never materialize it.
        if batch_first:
            return jnp.broadcast_to(embeddings[None, :, :], (bs, L, H))
        return jnp.broadcast_to(embeddings[:, None, :], (L, bs, H))
    return _expand_with_pallas(embeddings, bs=int(bs),
                               batch_first=bool(batch_first))


# ----------------------------- Module wrapper --------------------------------

class DeepPromptPallas:
    """JAX/Pallas re-implementation of uniperceiver DeepPrompt."""

    def __init__(self, hidden_size, input_prompt_len, target_prompt_len,
                 target_deep_prompt=True, share_deep_prompt=False,
                 dtype=jnp.float32, seed=0, min_pallas_bytes=_MIN_PALLAS_BYTES):
        self.target_prompt = target_deep_prompt and (not share_deep_prompt)
        self.min_pallas_bytes = min_pallas_bytes
        key = jax.random.PRNGKey(seed)
        k_in, k_tg = jax.random.split(key)
        # torch.nn.Embedding default init: N(0, 1)
        self.embedding_weight = jax.random.normal(
            k_in, (input_prompt_len, hidden_size), dtype=dtype)
        if self.target_prompt:
            self.target_embedding_weight = jax.random.normal(
                k_tg, (target_prompt_len, hidden_size), dtype=dtype)
        else:
            self.target_embedding_weight = None

    def __call__(self, x, batch_first=False, data_type=None, **kwargs):
        if data_type == "target" and self.target_prompt:
            embeddings = self.target_embedding_weight
        else:
            embeddings = self.embedding_weight
        bs = x.shape[0] if batch_first else x.shape[1]
        return deep_prompt_expand(embeddings, bs=int(bs),
                                  batch_first=bool(batch_first),
                                  min_pallas_bytes=self.min_pallas_bytes)


# --------------------------------- main ---------------------------------------

if __name__ == "__main__":
    HIDDEN = 32
    IN_LEN = 8
    TG_LEN = 16
    BS = 2
    SEQ = 8

    # min_pallas_bytes=0 forces the Pallas path even at these tiny demo shapes.
    module = DeepPromptPallas(
        hidden_size=HIDDEN, input_prompt_len=IN_LEN, target_prompt_len=TG_LEN,
        target_deep_prompt=True, share_deep_prompt=False, seed=0,
        min_pallas_bytes=0)

    key = jax.random.PRNGKey(0)
    # seq-first layout (seq, bs, hidden) for batch_first=False
    x_seq_first = jax.random.normal(key, (SEQ, BS, HIDDEN), dtype=jnp.float32)
    # batch-first layout (bs, seq, hidden) for batch_first=True
    x_batch_first = jnp.transpose(x_seq_first, (1, 0, 2))

    # Case 1: default (batch_first=False, input prompt) -> (L, bs, H)
    out1 = jax.block_until_ready(module(x_seq_first, batch_first=False))
    ref1 = jnp.broadcast_to(module.embedding_weight[:, None, :],
                            (IN_LEN, BS, HIDDEN))
    assert out1.shape == (IN_LEN, BS, HIDDEN)
    assert jnp.array_equal(out1, ref1)

    # Case 2: batch_first=True, target prompt -> (bs, L_target, H)
    out2 = jax.block_until_ready(
        module(x_batch_first, batch_first=True, data_type="target"))
    ref2 = jnp.broadcast_to(module.target_embedding_weight[None, :, :],
                            (BS, TG_LEN, HIDDEN))
    assert out2.shape == (BS, TG_LEN, HIDDEN)
    assert jnp.array_equal(out2, ref2)

    # Case 3: larger batch -> multi-step pipelined batch-first grid
    # (tb=8, grid=(2,)) exercising the ragged-free cdiv path.
    out3 = jax.block_until_ready(
        _expand_with_pallas(module.target_embedding_weight, bs=16,
                            batch_first=True))
    ref3 = jnp.broadcast_to(module.target_embedding_weight[None, :, :],
                            (16, TG_LEN, HIDDEN))
    assert out3.shape == (16, TG_LEN, HIDDEN)
    assert jnp.array_equal(out3, ref3)

    # Case 4: seq-first over the target table (L=16) -> tl=8, grid=(2,).
    out4 = jax.block_until_ready(
        _expand_with_pallas(module.target_embedding_weight, bs=BS,
                            batch_first=False))
    ref4 = jnp.broadcast_to(module.target_embedding_weight[:, None, :],
                            (TG_LEN, BS, HIDDEN))
    assert out4.shape == (TG_LEN, BS, HIDDEN)
    assert jnp.array_equal(out4, ref4)

    # Case 5: the size-gated XLA-broadcast fallback (default threshold).
    module_gated = DeepPromptPallas(
        hidden_size=HIDDEN, input_prompt_len=IN_LEN, target_prompt_len=TG_LEN,
        target_deep_prompt=True, share_deep_prompt=False, seed=0)
    out5 = jax.block_until_ready(module_gated(x_seq_first, batch_first=False))
    assert jnp.array_equal(out5, ref1)

    print("KERNEL_OK")
</pallas_src>

<mosaic_0001>
module attributes {stable_mosaic.version = 11 : i64} {
  func.func @_expand_seq_first_kernel(%arg0: i32, %arg1: memref<8x32xf32, #tpu.memory_space<vmem>>, %arg2: memref<8x64xf32, #tpu.memory_space<vmem>>) attributes {dimension_semantics = [#tpu.dimension_semantics<parallel>], iteration_bounds = array<i64: 1>, scalar_prefetch = 0 : i64, scratch_operands = 0 : i64, tpu.core_type = #tpu.core_type<tc>, window_params = [{transform_indices = @transform_0, window_bounds = array<i64: 8, 32>}, {transform_indices = @transform_1, window_bounds = array<i64: 8, 64>}]} {
    %c0 = arith.constant 0 : index
    %c0_0 = arith.constant 0 : index
    %0 = vector.load %arg1[%c0, %c0_0] : memref<8x32xf32, #tpu.memory_space<vmem>>, vector<8x32xf32>
    %1 = tpu.concatenate %0, %0 in 1 : vector<8x32xf32>, vector<8x32xf32> -> vector<8x64xf32>
    %c0_1 = arith.constant 0 : index
    %c0_2 = arith.constant 0 : index
    %2 = vector.load %arg2[%c0_1, %c0_2] : memref<8x64xf32, #tpu.memory_space<vmem>>, vector<8x64xf32>
    tpu.vector_store %arg2[%c0_1, %c0_2], %1 {strides = array<i32>} : memref<8x64xf32, #tpu.memory_space<vmem>>, vector<8x64xf32>,
    return
  }
  func.func @transform_0(%arg0: i32) -> (i32, i32) {
    %c0_i32 = arith.constant 0 : i32
    %c0_i32_0 = arith.constant 0 : i32
    return %arg0, %c0_i32 : i32, i32
  }
  func.func @transform_1(%arg0: i32) -> (i32, i32) {
    %c0_i32 = arith.constant 0 : i32
    %c0_i32_0 = arith.constant 0 : i32
    return %arg0, %c0_i32 : i32, i32
  }
}

</mosaic_0001>

<bundles_post_ra>
// kernel: _expand_with_pallas.1
= control target key start
LH: loop header
LB: loop body
LE: loop exit
PB: predicated region body
PF: predicated region fallthrough
CT: control target
= control target key end

     0   :  { %6 = vsyncpa [#allocation3], 0  ;;  %s58_s6 = smov [#allocation2]   ;;  %s76_s0 = inlined_call_operand.hbm [shape: f32[8,32], index: 0, kind: input, shape index: {}]   ;;  %s77_s1 = inlined_call_operand.vmem [shape: f32[8,64], index: 1, kind: output, shape index: {}]  }
   0x1   :  { %s13_s7 = sshll.u32 %s58_s6, 4  ;;  %s14_s7 = int_to_ptr.vmem [resolvable:$true] %s13_s7 }
   0x2   :  { %s44_s8 = scalar_lea.vmem %s14_s7, 128  ;;  %p49_p1 = scmp.lt.s32.totalorder %s14_s7, %s14_s7 }
   0x3   :  { %p45_p0 = scmp.ne.s32.totalorder %s14_s7, %s44_s8  ;;  %p50_p2 = scmp.lt.s32.totalorder %s44_s8, %s44_s8 }
   0x5   :  { %p51_p3 = por %p50_p2, %p49_p1 }
   0x7   :  { %p52_p4 = pnand %p51_p3, %p45_p0 }
   0x9   :  { %55 = shalt.err (!%p52_p4)
}
   0xa   :  { %16 = dma.hbm_to_vmem [thread:$0]  %s76_s0, 128, %s14_s7, [#allocation3]  }
   0xb   :  { %56 = dma.done.wait [#allocation3], 128  }
   0xc   :  { %57 = vsyncadd [#allocation3], 4294967168  ;;  %v20_v0 = vld [vmem:[#allocation2] sm:$0xff]  ;;  %s59_s11 = smov 32   ;;  %vm25_vm0 = vcmask 261120   ;;  %vm27_vm1 = vcmask 523264  }
   0xd   :  { %22 = vrot.lane.b32.xlu0 %v20_v0, %s59_s11 }
  0x7f   :  { %v23_v1 = vpop.permute.xlu0 %22 }
  0x80   :  { %v26_v2 = vsel %vm25_vm0, %v20_v0, %v23_v1 }
  0x81   :  { %28 = vst.msk [vmem:[%s77_s1] sm:$0xff] %vm27_vm1, %v26_v2 }
  0x82   :  { %33 = vsyncpa [#allocation3], 1 }

</bundles_post_ra>
